<compile_context>
chip_gen: v5e
topology: v5e:2x2
jax: 0.10.0
libtpu: 0.0.40
codegen_flags: <defaults>
</compile_context>

<pallas_src>
import jax
import jax.numpy as jnp
from jax.experimental import pallas as pl
from jax.experimental.pallas import tpu as pltpu


def _make_complex_conv_kernel(kh, kw, row_tile):
    """Builds the per-tile kernel closed over the static kernel geometry."""

    def kernel(x_ref, w_ref, b_ref, o_ref):
        # x_ref: (Hp, Wp, C_in)        padded NHWC slab, resident per batch elem
        # w_ref: (kh*kw, C_in, C_out)  combined complex weights, resident
        # b_ref: (1, C_out)            combined bias, resident
        # o_ref: (row_tile, W, C_out)  output row-tile
        t_h, w_out, c_out = o_ref.shape
        c_in = x_ref.shape[-1]

        h = pl.program_id(1)
        row0 = pl.multiple_of(h * row_tile, row_tile)

        acc = jnp.zeros((t_h * w_out, c_out), jnp.float32)
        # Static 3x3 tap loop (unrolled): each tap is one (t_h*W, C_in)@(C_in, C_out)
        # MXU matmul accumulating in f32.
        for ky in range(kh):
            for kx in range(kw):
                win = x_ref[pl.ds(row0 + ky, t_h), pl.ds(kx, w_out), :]
                patch = win.reshape(t_h * w_out, c_in)
                acc = acc + jnp.dot(
                    patch, w_ref[ky * kw + kx],
                    preferred_element_type=jnp.float32)

        out = acc + b_ref[...].astype(jnp.float32)   # single bias add per tile
        o_ref[...] = out.reshape(t_h, w_out, c_out).astype(o_ref.dtype)

    return kernel


def complex_conv2d(x, w_real, w_imag, b_real, b_imag, *, row_tile=8):
    """ComplexConv forward with Conv2d sub-convolutions.

    x            : (B, C_in, H, W)  NCHW, channels = [real_half | imag_half]
    w_real/w_imag: (C_out_half, C_in_half, KH, KW)  (PyTorch Conv2d layout)
    b_real/b_imag: (C_out_half,)
    Returns (B, 2*C_out_half, H, W), channels = [real_half | imag_half].
    """
    B, C_in, H, W = x.shape
    out_half, in_half, KH, KW = w_real.shape
    assert C_in == 2 * in_half
    C_out = 2 * out_half
    dtype = x.dtype

    # ---- wrapper-side layout plumbing (done once, tiny arrays) -------------
    # Combined complex weight so a single real conv reproduces
    #   out_real = conv(real, Wr) - conv(imag, Wi) + (br - bi)
    #   out_imag = conv(real, Wi) + conv(imag, Wr) + (br + bi)
    # Pre-transposed to (in, out): no in-kernel .T through the XLU.
    wr_t = jnp.transpose(w_real, (2, 3, 1, 0))  # (KH, KW, in_half, out_half)
    wi_t = jnp.transpose(w_imag, (2, 3, 1, 0))
    w_top = jnp.concatenate([wr_t, wi_t], axis=-1)    # real-input rows
    w_bot = jnp.concatenate([-wi_t, wr_t], axis=-1)   # imag-input rows
    w_cplx = jnp.concatenate([w_top, w_bot], axis=-2)           # (KH,KW,C_in,C_out)
    w_cplx = w_cplx.reshape(KH * KW, C_in, C_out).astype(dtype)
    b_cplx = jnp.concatenate([b_real - b_imag, b_real + b_imag])
    b_cplx = b_cplx.reshape(1, C_out).astype(dtype)

    # NCHW -> NHWC and zero "same" padding on H/W.
    ph, pw = KH // 2, KW // 2
    x_nhwc = jnp.transpose(x, (0, 2, 3, 1))
    x_pad = jnp.pad(x_nhwc, ((0, 0), (ph, ph), (pw, pw), (0, 0)))
    Hp, Wp = H + 2 * ph, W + 2 * pw

    # Row tile: largest power-of-two divisor of H not exceeding `row_tile`.
    th = row_tile
    while H % th != 0:
        th //= 2
    n_h = H // th

    kernel = _make_complex_conv_kernel(KH, KW, th)

    itemsize = jnp.dtype(dtype).itemsize
    flops = 2 * B * H * W * KH * KW * C_in * C_out
    bytes_accessed = (x_pad.size + B * H * W * C_out
                      + w_cplx.size + b_cplx.size) * itemsize

    out_nhwc = pl.pallas_call(
        kernel,
        out_shape=jax.ShapeDtypeStruct((B, H, W, C_out), dtype),
        grid=(B, n_h),
        in_specs=[
            # Padded input slab: resident across the row-tile axis,
            # re-fetched only when the batch index changes.
            pl.BlockSpec((None, Hp, Wp, C_in), lambda b, h: (b, 0, 0, 0)),
            # Combined weights / bias: resident for the whole grid.
            pl.BlockSpec((KH * KW, C_in, C_out), lambda b, h: (0, 0, 0)),
            pl.BlockSpec((1, C_out), lambda b, h: (0, 0)),
        ],
        out_specs=pl.BlockSpec((None, th, W, C_out), lambda b, h: (b, h, 0, 0)),
        compiler_params=pltpu.CompilerParams(
            dimension_semantics=("parallel", "arbitrary")),
        cost_estimate=pl.CostEstimate(
            flops=flops, transcendentals=0, bytes_accessed=bytes_accessed),
    )(x_pad, w_cplx, b_cplx)

    return jnp.transpose(out_nhwc, (0, 3, 1, 2))


if __name__ == "__main__":
    # Small shapes consistent with the module: batch=2, channels=4
    # (2 real + 2 imag), spatial 16x16, 3x3 "same" convs, out channels 4.
    B, C_in, H, W = 2, 4, 16, 16
    in_half = C_in // 2
    out_half = 2
    KH = KW = 3

    key = jax.random.PRNGKey(0)
    kx, kwr, kwi, kbr, kbi = jax.random.split(key, 5)

    x = jax.random.normal(kx, (B, C_in, H, W), dtype=jnp.float32)

    # Deterministic init mimicking nn.Conv2d's U(-1/sqrt(fan_in), 1/sqrt(fan_in)).
    fan_in = in_half * KH * KW
    bound = 1.0 / (fan_in ** 0.5)
    w_real = jax.random.uniform(kwr, (out_half, in_half, KH, KW),
                                jnp.float32, -bound, bound)
    w_imag = jax.random.uniform(kwi, (out_half, in_half, KH, KW),
                                jnp.float32, -bound, bound)
    b_real = jax.random.uniform(kbr, (out_half,), jnp.float32, -bound, bound)
    b_imag = jax.random.uniform(kbi, (out_half,), jnp.float32, -bound, bound)

    out = complex_conv2d(x, w_real, w_imag, b_real, b_imag)
    out = jax.block_until_ready(out)

    # Pure-JAX reference replicating ComplexConv.forward with Conv2d submodules.
    def conv2d(inp, w, b):
        y = jax.lax.conv_general_dilated(
            inp, w, window_strides=(1, 1), padding="SAME",
            dimension_numbers=("NCHW", "OIHW", "NCHW"))
        return y + b[None, :, None, None]

    real, imag = jnp.split(x, 2, axis=1)
    real2real = conv2d(real, w_real, b_real)
    imag2imag = conv2d(imag, w_imag, b_imag)
    real2imag = conv2d(real, w_imag, b_imag)
    imag2real = conv2d(imag, w_real, b_real)
    ref = jnp.concatenate([real2real - imag2imag, real2imag + imag2real], axis=1)

    assert out.shape == (B, 2 * out_half, H, W)
    err = float(jnp.max(jnp.abs(out - ref)))
    assert jnp.allclose(out, ref, atol=1e-4, rtol=1e-4), err

    print("KERNEL_OK")
</pallas_src>

<mosaic_0001>
module attributes {stable_mosaic.version = 11 : i64} {
  func.func @kernel(%arg0: i32, %arg1: i32, %arg2: memref<1x18x18x4xf32, #tpu.memory_space<vmem>>, %arg3: memref<9x4x4xf32, #tpu.memory_space<vmem>>, %arg4: memref<1x4xf32, #tpu.memory_space<vmem>>, %arg5: memref<1x8x16x4xf32, #tpu.memory_space<vmem>>) attributes {dimension_semantics = [#tpu.dimension_semantics<parallel>, #tpu.dimension_semantics<arbitrary>], iteration_bounds = array<i64: 2, 2>, scalar_prefetch = 0 : i64, scratch_operands = 0 : i64, tpu.core_type = #tpu.core_type<tc>, window_params = [{transform_indices = @transform_0, window_bounds = array<i64: 1, 18, 18, 4>}, {pipeline_mode = #tpu.pipeline_mode<synchronous>, transform_indices = @transform_1, window_bounds = array<i64: 9, 4, 4>}, {pipeline_mode = #tpu.pipeline_mode<synchronous>, transform_indices = @transform_2, window_bounds = array<i64: 1, 4>}, {transform_indices = @transform_3, window_bounds = array<i64: 1, 8, 16, 4>}]} {
    %c8_i32 = arith.constant 8 : i32
    %0 = arith.muli %arg1, %c8_i32 : i32
    %1 = tpu.assume_multiple %0, 8 : i32
    %cst = arith.constant 0.000000e+00 : f32
    %2 = vector.broadcast %cst : f32 to vector<128x4xf32>
    %c0_i32 = arith.constant 0 : i32
    %3 = arith.addi %1, %c0_i32 : i32
    %c0 = arith.constant 0 : index
    %4 = arith.index_cast %3 : i32 to index
    %c0_0 = arith.constant 0 : index
    %c0_1 = arith.constant 0 : index
    %5 = vector.load %arg2[%c0, %4, %c0_0, %c0_1] : memref<1x18x18x4xf32, #tpu.memory_space<vmem>>, vector<1x8x16x4xf32>
    %6 = vector.shape_cast %5 : vector<1x8x16x4xf32> to vector<8x16x4xf32>
    %7 = vector.shape_cast %6 : vector<8x16x4xf32> to vector<128x4xf32>
    %c0_2 = arith.constant 0 : index
    %c0_3 = arith.constant 0 : index
    %c0_4 = arith.constant 0 : index
    %8 = vector.load %arg3[%c0_2, %c0_3, %c0_4] : memref<9x4x4xf32, #tpu.memory_space<vmem>>, vector<1x4x4xf32>
    %9 = vector.shape_cast %8 : vector<1x4x4xf32> to vector<4x4xf32>
    %cst_5 = arith.constant dense<0.000000e+00> : vector<128x4xf32>
    %10 = tpu.matmul %7, %9, %cst_5 {dimension_numbers = #tpu.dot_dimension_numbers<[1], [0], [0], [1], [0, 0, 1, 1], [], []>} : vector<128x4xf32>, vector<4x4xf32>, vector<128x4xf32> -> vector<128x4xf32>
    %11 = arith.addf %2, %10 : vector<128x4xf32>
    %c0_i32_6 = arith.constant 0 : i32
    %12 = arith.addi %1, %c0_i32_6 : i32
    %c0_7 = arith.constant 0 : index
    %13 = arith.index_cast %12 : i32 to index
    %c1 = arith.constant 1 : index
    %c0_8 = arith.constant 0 : index
    %14 = vector.load %arg2[%c0_7, %13, %c1, %c0_8] : memref<1x18x18x4xf32, #tpu.memory_space<vmem>>, vector<1x8x16x4xf32>
    %15 = vector.shape_cast %14 : vector<1x8x16x4xf32> to vector<8x16x4xf32>
    %16 = vector.shape_cast %15 : vector<8x16x4xf32> to vector<128x4xf32>
    %c1_9 = arith.constant 1 : index
    %c0_10 = arith.constant 0 : index
    %c0_11 = arith.constant 0 : index
    %17 = vector.load %arg3[%c1_9, %c0_10, %c0_11] : memref<9x4x4xf32, #tpu.memory_space<vmem>>, vector<1x4x4xf32>
    %18 = vector.shape_cast %17 : vector<1x4x4xf32> to vector<4x4xf32>
    %cst_12 = arith.constant dense<0.000000e+00> : vector<128x4xf32>
    %19 = tpu.matmul %16, %18, %cst_12 {dimension_numbers = #tpu.dot_dimension_numbers<[1], [0], [0], [1], [0, 0, 1, 1], [], []>} : vector<128x4xf32>, vector<4x4xf32>, vector<128x4xf32> -> vector<128x4xf32>
    %20 = arith.addf %11, %19 : vector<128x4xf32>
    %c0_i32_13 = arith.constant 0 : i32
    %21 = arith.addi %1, %c0_i32_13 : i32
    %c0_14 = arith.constant 0 : index
    %22 = arith.index_cast %21 : i32 to index
    %c2 = arith.constant 2 : index
    %c0_15 = arith.constant 0 : index
    %23 = vector.load %arg2[%c0_14, %22, %c2, %c0_15] : memref<1x18x18x4xf32, #tpu.memory_space<vmem>>, vector<1x8x16x4xf32>
    %24 = vector.shape_cast %23 : vector<1x8x16x4xf32> to vector<8x16x4xf32>
    %25 = vector.shape_cast %24 : vector<8x16x4xf32> to vector<128x4xf32>
    %c2_16 = arith.constant 2 : index
    %c0_17 = arith.constant 0 : index
    %c0_18 = arith.constant 0 : index
    %26 = vector.load %arg3[%c2_16, %c0_17, %c0_18] : memref<9x4x4xf32, #tpu.memory_space<vmem>>, vector<1x4x4xf32>
    %27 = vector.shape_cast %26 : vector<1x4x4xf32> to vector<4x4xf32>
    %cst_19 = arith.constant dense<0.000000e+00> : vector<128x4xf32>
    %28 = tpu.matmul %25, %27, %cst_19 {dimension_numbers = #tpu.dot_dimension_numbers<[1], [0], [0], [1], [0, 0, 1, 1], [], []>} : vector<128x4xf32>, vector<4x4xf32>, vector<128x4xf32> -> vector<128x4xf32>
    %29 = arith.addf %20, %28 : vector<128x4xf32>
    %c1_i32 = arith.constant 1 : i32
    %30 = arith.addi %1, %c1_i32 : i32
    %c0_20 = arith.constant 0 : index
    %31 = arith.index_cast %30 : i32 to index
    %c0_21 = arith.constant 0 : index
    %c0_22 = arith.constant 0 : index
    %32 = vector.load %arg2[%c0_20, %31, %c0_21, %c0_22] : memref<1x18x18x4xf32, #tpu.memory_space<vmem>>, vector<1x8x16x4xf32>
    %33 = vector.shape_cast %32 : vector<1x8x16x4xf32> to vector<8x16x4xf32>
    %34 = vector.shape_cast %33 : vector<8x16x4xf32> to vector<128x4xf32>
    %c3 = arith.constant 3 : index
    %c0_23 = arith.constant 0 : index
    %c0_24 = arith.constant 0 : index
    %35 = vector.load %arg3[%c3, %c0_23, %c0_24] : memref<9x4x4xf32, #tpu.memory_space<vmem>>, vector<1x4x4xf32>
    %36 = vector.shape_cast %35 : vector<1x4x4xf32> to vector<4x4xf32>
    %cst_25 = arith.constant dense<0.000000e+00> : vector<128x4xf32>
    %37 = tpu.matmul %34, %36, %cst_25 {dimension_numbers = #tpu.dot_dimension_numbers<[1], [0], [0], [1], [0, 0, 1, 1], [], []>} : vector<128x4xf32>, vector<4x4xf32>, vector<128x4xf32> -> vector<128x4xf32>
    %38 = arith.addf %29, %37 : vector<128x4xf32>
    %c1_i32_26 = arith.constant 1 : i32
    %39 = arith.addi %1, %c1_i32_26 : i32
    %c0_27 = arith.constant 0 : index
    %40 = arith.index_cast %39 : i32 to index
    %c1_28 = arith.constant 1 : index
    %c0_29 = arith.constant 0 : index
    %41 = vector.load %arg2[%c0_27, %40, %c1_28, %c0_29] : memref<1x18x18x4xf32, #tpu.memory_space<vmem>>, vector<1x8x16x4xf32>
    %42 = vector.shape_cast %41 : vector<1x8x16x4xf32> to vector<8x16x4xf32>
    %43 = vector.shape_cast %42 : vector<8x16x4xf32> to vector<128x4xf32>
    %c4 = arith.constant 4 : index
    %c0_30 = arith.constant 0 : index
    %c0_31 = arith.constant 0 : index
    %44 = vector.load %arg3[%c4, %c0_30, %c0_31] : memref<9x4x4xf32, #tpu.memory_space<vmem>>, vector<1x4x4xf32>
    %45 = vector.shape_cast %44 : vector<1x4x4xf32> to vector<4x4xf32>
    %cst_32 = arith.constant dense<0.000000e+00> : vector<128x4xf32>
    %46 = tpu.matmul %43, %45, %cst_32 {dimension_numbers = #tpu.dot_dimension_numbers<[1], [0], [0], [1], [0, 0, 1, 1], [], []>} : vector<128x4xf32>, vector<4x4xf32>, vector<128x4xf32> -> vector<128x4xf32>
    %47 = arith.addf %38, %46 : vector<128x4xf32>
    %c1_i32_33 = arith.constant 1 : i32
    %48 = arith.addi %1, %c1_i32_33 : i32
    %c0_34 = arith.constant 0 : index
    %49 = arith.index_cast %48 : i32 to index
    %c2_35 = arith.constant 2 : index
    %c0_36 = arith.constant 0 : index
    %50 = vector.load %arg2[%c0_34, %49, %c2_35, %c0_36] : memref<1x18x18x4xf32, #tpu.memory_space<vmem>>, vector<1x8x16x4xf32>
    %51 = vector.shape_cast %50 : vector<1x8x16x4xf32> to vector<8x16x4xf32>
    %52 = vector.shape_cast %51 : vector<8x16x4xf32> to vector<128x4xf32>
    %c5 = arith.constant 5 : index
    %c0_37 = arith.constant 0 : index
    %c0_38 = arith.constant 0 : index
    %53 = vector.load %arg3[%c5, %c0_37, %c0_38] : memref<9x4x4xf32, #tpu.memory_space<vmem>>, vector<1x4x4xf32>
    %54 = vector.shape_cast %53 : vector<1x4x4xf32> to vector<4x4xf32>
    %cst_39 = arith.constant dense<0.000000e+00> : vector<128x4xf32>
    %55 = tpu.matmul %52, %54, %cst_39 {dimension_numbers = #tpu.dot_dimension_numbers<[1], [0], [0], [1], [0, 0, 1, 1], [], []>} : vector<128x4xf32>, vector<4x4xf32>, vector<128x4xf32> -> vector<128x4xf32>
    %56 = arith.addf %47, %55 : vector<128x4xf32>
    %c2_i32 = arith.constant 2 : i32
    %57 = arith.addi %1, %c2_i32 : i32
    %c0_40 = arith.constant 0 : index
    %58 = arith.index_cast %57 : i32 to index
    %c0_41 = arith.constant 0 : index
    %c0_42 = arith.constant 0 : index
    %59 = vector.load %arg2[%c0_40, %58, %c0_41, %c0_42] : memref<1x18x18x4xf32, #tpu.memory_space<vmem>>, vector<1x8x16x4xf32>
    %60 = vector.shape_cast %59 : vector<1x8x16x4xf32> to vector<8x16x4xf32>
    %61 = vector.shape_cast %60 : vector<8x16x4xf32> to vector<128x4xf32>
    %c6 = arith.constant 6 : index
    %c0_43 = arith.constant 0 : index
    %c0_44 = arith.constant 0 : index
    %62 = vector.load %arg3[%c6, %c0_43, %c0_44] : memref<9x4x4xf32, #tpu.memory_space<vmem>>, vector<1x4x4xf32>
    %63 = vector.shape_cast %62 : vector<1x4x4xf32> to vector<4x4xf32>
    %cst_45 = arith.constant dense<0.000000e+00> : vector<128x4xf32>
    %64 = tpu.matmul %61, %63, %cst_45 {dimension_numbers = #tpu.dot_dimension_numbers<[1], [0], [0], [1], [0, 0, 1, 1], [], []>} : vector<128x4xf32>, vector<4x4xf32>, vector<128x4xf32> -> vector<128x4xf32>
    %65 = arith.addf %56, %64 : vector<128x4xf32>
    %c2_i32_46 = arith.constant 2 : i32
    %66 = arith.addi %1, %c2_i32_46 : i32
    %c0_47 = arith.constant 0 : index
    %67 = arith.index_cast %66 : i32 to index
    %c1_48 = arith.constant 1 : index
    %c0_49 = arith.constant 0 : index
    %68 = vector.load %arg2[%c0_47, %67, %c1_48, %c0_49] : memref<1x18x18x4xf32, #tpu.memory_space<vmem>>, vector<1x8x16x4xf32>
    %69 = vector.shape_cast %68 : vector<1x8x16x4xf32> to vector<8x16x4xf32>
    %70 = vector.shape_cast %69 : vector<8x16x4xf32> to vector<128x4xf32>
    %c7 = arith.constant 7 : index
    %c0_50 = arith.constant 0 : index
    %c0_51 = arith.constant 0 : index
    %71 = vector.load %arg3[%c7, %c0_50, %c0_51] : memref<9x4x4xf32, #tpu.memory_space<vmem>>, vector<1x4x4xf32>
    %72 = vector.shape_cast %71 : vector<1x4x4xf32> to vector<4x4xf32>
    %cst_52 = arith.constant dense<0.000000e+00> : vector<128x4xf32>
    %73 = tpu.matmul %70, %72, %cst_52 {dimension_numbers = #tpu.dot_dimension_numbers<[1], [0], [0], [1], [0, 0, 1, 1], [], []>} : vector<128x4xf32>, vector<4x4xf32>, vector<128x4xf32> -> vector<128x4xf32>
    %74 = arith.addf %65, %73 : vector<128x4xf32>
    %c2_i32_53 = arith.constant 2 : i32
    %75 = arith.addi %1, %c2_i32_53 : i32
    %c0_54 = arith.constant 0 : index
    %76 = arith.index_cast %75 : i32 to index
    %c2_55 = arith.constant 2 : index
    %c0_56 = arith.constant 0 : index
    %77 = vector.load %arg2[%c0_54, %76, %c2_55, %c0_56] : memref<1x18x18x4xf32, #tpu.memory_space<vmem>>, vector<1x8x16x4xf32>
    %78 = vector.shape_cast %77 : vector<1x8x16x4xf32> to vector<8x16x4xf32>
    %79 = vector.shape_cast %78 : vector<8x16x4xf32> to vector<128x4xf32>
    %c8 = arith.constant 8 : index
    %c0_57 = arith.constant 0 : index
    %c0_58 = arith.constant 0 : index
    %80 = vector.load %arg3[%c8, %c0_57, %c0_58] : memref<9x4x4xf32, #tpu.memory_space<vmem>>, vector<1x4x4xf32>
    %81 = vector.shape_cast %80 : vector<1x4x4xf32> to vector<4x4xf32>
    %cst_59 = arith.constant dense<0.000000e+00> : vector<128x4xf32>
    %82 = tpu.matmul %79, %81, %cst_59 {dimension_numbers = #tpu.dot_dimension_numbers<[1], [0], [0], [1], [0, 0, 1, 1], [], []>} : vector<128x4xf32>, vector<4x4xf32>, vector<128x4xf32> -> vector<128x4xf32>
    %83 = arith.addf %74, %82 : vector<128x4xf32>
    %c0_60 = arith.constant 0 : index
    %c0_61 = arith.constant 0 : index
    %84 = vector.load %arg4[%c0_60, %c0_61] : memref<1x4xf32, #tpu.memory_space<vmem>>, vector<1x4xf32>
    %85 = vector.broadcast %84 : vector<1x4xf32> to vector<128x4xf32>
    %86 = arith.addf %83, %85 : vector<128x4xf32>
    %87 = vector.shape_cast %86 : vector<128x4xf32> to vector<8x16x4xf32>
    %c0_62 = arith.constant 0 : index
    %c0_63 = arith.constant 0 : index
    %c0_64 = arith.constant 0 : index
    %c0_65 = arith.constant 0 : index
    %88 = vector.load %arg5[%c0_62, %c0_63, %c0_64, %c0_65] : memref<1x8x16x4xf32, #tpu.memory_space<vmem>>, vector<1x8x16x4xf32>
    %89 = vector.shape_cast %88 : vector<1x8x16x4xf32> to vector<8x16x4xf32>
    %90 = vector.shape_cast %87 : vector<8x16x4xf32> to vector<1x8x16x4xf32>
    tpu.vector_store %arg5[%c0_62, %c0_63, %c0_64, %c0_65], %90 {strides = array<i32>} : memref<1x8x16x4xf32, #tpu.memory_space<vmem>>, vector<1x8x16x4xf32>,
    return
  }
  func.func @transform_0(%arg0: i32, %arg1: i32) -> (i32, i32, i32, i32) {
    %c0_i32 = arith.constant 0 : i32
    %c0_i32_0 = arith.constant 0 : i32
    %c0_i32_1 = arith.constant 0 : i32
    %c0_i32_2 = arith.constant 0 : i32
    return %arg0, %c0_i32, %c0_i32_0, %c0_i32_1 : i32, i32, i32, i32
  }
  func.func @transform_1(%arg0: i32, %arg1: i32) -> (i32, i32, i32) {
    %c0_i32 = arith.constant 0 : i32
    %c0_i32_0 = arith.constant 0 : i32
    %c0_i32_1 = arith.constant 0 : i32
    %c0_i32_2 = arith.constant 0 : i32
    return %c0_i32, %c0_i32_0, %c0_i32_1 : i32, i32, i32
  }
  func.func @transform_2(%arg0: i32, %arg1: i32) -> (i32, i32) {
    %c0_i32 = arith.constant 0 : i32
    %c0_i32_0 = arith.constant 0 : i32
    %c0_i32_1 = arith.constant 0 : i32
    return %c0_i32, %c0_i32_0 : i32, i32
  }
  func.func @transform_3(%arg0: i32, %arg1: i32) -> (i32, i32, i32, i32) {
    %c0_i32 = arith.constant 0 : i32
    %c0_i32_0 = arith.constant 0 : i32
    %c0_i32_1 = arith.constant 0 : i32
    return %arg0, %arg1, %c0_i32, %c0_i32_0 : i32, i32, i32, i32
  }
}

</mosaic_0001>

<bundles_post_ra>
// kernel: tpu_custom_call.1
= control target key start
LH: loop header
LB: loop body
LE: loop exit
PB: predicated region body
PF: predicated region fallthrough
CT: control target
= control target key end

     0   :  { %s2040_s12 = smov 0   ;;  %s2042_s13 = smov 0   ;;  %s2687_s0 = inlined_call_operand.vmem [shape: f32[2,18,18,4], index: 0, kind: input, shape index: {}]   ;;  %s2688_s1 = inlined_call_operand.vmem [shape: f32[9,4,4], index: 1, kind: input, shape index: {}]   ;;  %s2689_s2 = inlined_call_operand.vmem [shape: f32[1,4], index: 2, kind: input, shape index: {}]   ;;  %s2690_s3 = inlined_call_operand.vmem [shape: f32[2,16,16,4], index: 3, kind: output, shape index: {}]  }
   0x1   :  { %s2044_s14 = smov 0   ;;  %s2046_s15 = smov 0  }
   0x2   :  { %s2048_s16 = smov 0  }
   0x3 LB: > { %s22_s17 = sadd.s32 1, %s2010_s14  ;;  %s25_s18 = sadd.s32 1, %s2014_s15  ;;  %s2018_s16 = sphi %s2048_s16, %s13_s16   ;;  %s2014_s15 = sphi %s2046_s15, %s2703_s15   ;;  %s2010_s14 = sphi %s2044_s14, %s2702_s14   ;;  %s2006_s13 = sphi %s2042_s13, %s2701_s13   ;;  %s2002_s12 = sphi %s2040_s12, %s2700_s12  }
   0x4   : > { %p23_p0 = scmp.ge.s32.totalorder %s22_s17, 2  ;;  %p1664_p1 = scmp.ge.s32.totalorder %s2018_s16, 1 }
   0x5   : > { %p151_p2 = scmp.lt.s32.totalorder %s2018_s16, 5 }
   0x6   : > { %s2705_s17 = smov (%p23_p0, %s22_s17), 0  ;;  %s2707_s18 = smov (!%p23_p0, %s25_s18), %s2014_s15 }
   0x7   : > { %p152_p3 = pnand %p1664_p1, %p151_p2  ;;  %p27_p4 = scmp.ge.s32.totalorder %s2707_s18, 2 }
   0x9   : > { %s2709_s18 = smov (%p27_p4, %s2707_s18), 0  ;;  %155 = sbr.rel (%p152_p3) target bundleno = 443 (0x1bb), region = 32 }
   0xe   : > { %v1672_v0 = vld [vmem:[%s2688_s1 + $0x4] sm:$0xf]  ;;  %vm283_vm0 = vcmask 1043456   ;;  %p180_p5 = scmp.lt.s32.totalorder %s2006_s13, 1  ;;  %v1707_v1 = vld [vmem:[%s2688_s1 + $0x8] sm:$0xf] }
   0xf   : > { %1935 = vmatpush.msk.msra.mxu1 %vm283_vm0, %v1672_v0  ;;  %1936 = vmatpush.msk.msra.mxu2 %vm283_vm0, %v1672_v0  ;;  %v1743_v2 = vld [vmem:[%s2688_s1 + $0xc] sm:$0xf]  ;;  %v215_v3 = vld [vmem:[%s2688_s1] sm:$0xf]  ;;  %v1777_v4 = vld [vmem:[%s2688_s1 + $0x10] sm:$0xf] }
  0x10   : > { %s2711_s13 = smov (!%p180_p5, %s2006_s13), 1  ;;  %1937 = vmatpush.msk.msra.mxu3 %vm283_vm0, %v1672_v0  ;;  %s1671_s29 = smul.u32 192, %s2002_s12  ;;  %1673 = vmatpush.msk.msra.mxu0 %vm283_vm0, %v1672_v0  ;;  %vm234_vm1 = vcmask 31744   ;;  %v1847_v9 = vld [vmem:[%s2688_s1 + $0x18] sm:$0xf] }
  0x11   : > { %1708 = vmatpush.msk.msrb.mxu2 %vm283_vm0, %v1707_v1  ;;  %1690 = vmatpush.msk.msrb.mxu1 %vm283_vm0, %v215_v3  ;;  %s1938_s30 = smul.u32 432, %s2711_s13  ;;  %v1881_v12 = vld [vmem:[%s2688_s1 + $0x1c] sm:$0xf]  ;;  %v1811_v15 = vld [vmem:[%s2688_s1 + $0x14] sm:$0xf]  ;;  %s1666_s23 = sshll.u32 %s2002_s12, 3 }
  0x12   : > { %1744 = vmatpush.msk.msrb.mxu3 %vm283_vm0, %v1743_v2  ;;  %1778 = vmatpush.msk.msrb.mxu0 %vm283_vm0, %v1777_v4  ;;  %v1915_v16 = vld [vmem:[%s2688_s1 + $0x20] sm:$0xf]  ;;  %p188_p6 = scmp.lt.s32.totalorder %s1666_s23, 15  ;;  %s1668_s24 = sshll.u32 %s2711_s13, 5 }
  0x13   : > { %s184_s6 = scalar_lea.vmem %s2687_s0, %s1938_s30 }
  0x14   : > { %s2102_s7 = scalar_lea.vmem %s184_s6, %s1671_s29  ;;  %s2713_s23 = smov (!%p188_p6, %s1666_s23), 15 }
  0x15   : > { %v2105_v5 = vld [vmem:[%s2102_s7 + $0x31] sm:$0xff]  ;;  %v2108_v6 = vld [vmem:[%s2102_s7 + $0x61] sm:$0xff]  ;;  %v2125_v10 = vld [vmem:[%s2102_s7 + $0x39] sm:$0xff]  ;;  %s1667_s12 = sshll.u32 %s2713_s23, 1 }
  0x16   : > { %v2111_v7 = vld [vmem:[%s2102_s7 + $0x91] sm:$0xff]  ;;  %1678 = vmatmul.msk.f32.vlgmr.msra.gmra.mxu1 %vm234_vm1, %v2105_v5  ;;  %1682 = vmatmul.msk.f32.vlgmr.msra.gmra.mxu2 %vm234_vm1, %v2108_v6  ;;  %v216_v8 = vld [vmem:[%s2102_s7 + $0x1] sm:$0xff]  ;;  %v2128_v11 = vld [vmem:[%s2102_s7 + $0x69] sm:$0xff]  ;;  %s192_s25 = sadd.s32 %s1668_s24, %s1667_s12 }
  0x17   : > { %1686 = vmatmul.msk.f32.vlgmr.msra.gmra.mxu3 %vm234_vm1, %v2111_v7  ;;  %1674 = vmatmul.msk.f32.vlgmr.msra.gmra.mxu0 %vm234_vm1, %v216_v8  ;;  %v2135_v13 = vld [vmem:[%s2102_s7 + $0x99] sm:$0xff]  ;;  %v217_v14 = vld [vmem:[%s2102_s7 + $0x9] sm:$0xff]  ;;  %v2172_v21 = vld [vmem:[%s2102_s7 + $0x51] sm:$0xff]  ;;  %s1669_s26 = sshll.u32 %s192_s25, 3 }
  0x18   : > { %1848 = vmatpush.msk.msra.mxu2 %vm283_vm0, %v1847_v9  ;;  %1882 = vmatpush.msk.msra.mxu3 %vm283_vm0, %v1881_v12  ;;  %v2155_v17 = vld [vmem:[%s2102_s7 + $0x49] sm:$0xff]  ;;  %v2158_v18 = vld [vmem:[%s2102_s7 + $0x79] sm:$0xff]  ;;  %v2175_v22 = vld [vmem:[%s2102_s7 + $0x81] sm:$0xff]  ;;  %s2607_s13 = scalar_lea.vmem %s2690_s3, %s1669_s26 }
  0x19   : > { %1812 = vmatpush.msk.msra.mxu1 %vm283_vm0, %v1811_v15  ;;  %1916 = vmatpush.msk.msra.mxu0 %vm283_vm0, %v1915_v16  ;;  %v2161_v19 = vld [vmem:[%s2102_s7 + $0xa9] sm:$0xff]  ;;  %v218_v20 = vld [vmem:[%s2102_s7 + $0x19] sm:$0xff]  ;;  %v2178_v23 = vld [vmem:[%s2102_s7 + $0xb1] sm:$0xff] }
  0x1a   : > { %v219_v24 = vld [vmem:[%s2102_s7 + $0x21] sm:$0xff]  ;;  %v1727_v27 = vld [vmem:[%s2102_s7 + $0x18] sm:$0xff]  ;;  %v469_v29 = vld [vmem:[%s2102_s7 + $0xa] sm:$0xff] }
  0x1b   : > { %v199_v25 = vld [vmem:[%s2102_s7] sm:$0xff]  ;;  %v200_v28 = vld [vmem:[%s2102_s7 + $0x8] sm:$0xff]  ;;  %v2206_v32 = vld [vmem:[%s2102_s7 + $0x30] sm:$0xff] }
  0x1c   : > { %v468_v26 = vld [vmem:[%s2102_s7 + $0x2] sm:$0xff]  ;;  %v2203_v31 = vld [vmem:[%s2102_s7 + $0x1a] sm:$0xff]  ;;  %v2229_v35 = vld [vmem:[%s2102_s7 + $0x32] sm:$0xff] }
  0x1d   : > { %v1728_v30 = vld [vmem:[%s2102_s7 + $0x20] sm:$0xff]  ;;  %v2219_v34 = vld [vmem:[%s2102_s7 + $0x38] sm:$0xff]  ;;  %v2232_v36 = vld [vmem:[%s2102_s7 + $0x48] sm:$0xff] }
  0x1e   : > { %1679 = vmatmul.msk.f32.gmra.mxu1 %vm234_vm1, %v2125_v10  ;;  %1683 = vmatmul.msk.f32.gmra.mxu2 %vm234_vm1, %v2128_v11  ;;  %v2216_v33 = vld [vmem:[%s2102_s7 + $0x22] sm:$0xff]  ;;  %v2243_v37 = vld [vmem:[%s2102_s7 + $0x3a] sm:$0xff]  ;;  %v2246_v38 = vld [vmem:[%s2102_s7 + $0x50] sm:$0xff] }
  0x1f   : > { %1687 = vmatmul.msk.f32.gmra.mxu3 %vm234_vm1, %v2135_v13  ;;  %1675 = vmatmul.msk.f32.gmra.mxu0 %vm234_vm1, %v217_v14  ;;  %v2257_v39 = vld [vmem:[%s2102_s7 + $0x4a] sm:$0xff]  ;;  %v2260_v40 = vld [vmem:[%s2102_s7 + $0x60] sm:$0xff]  ;;  %v2271_v41 = vld [vmem:[%s2102_s7 + $0x52] sm:$0xff] }
  0x20   : > { %v2274_v42 = vld [vmem:[%s2102_s7 + $0x68] sm:$0xff]  ;;  %v2288_v44 = vld [vmem:[%s2102_s7 + $0x78] sm:$0xff]  ;;  %v2302_v46 = vld [vmem:[%s2102_s7 + $0x80] sm:$0xff] }
  0x21   : > { %v2285_v43 = vld [vmem:[%s2102_s7 + $0x62] sm:$0xff]  ;;  %v2299_v45 = vld [vmem:[%s2102_s7 + $0x6a] sm:$0xff]  ;;  %v2313_v47 = vld [vmem:[%s2102_s7 + $0x7a] sm:$0xff] }
  0x22   : > { %v2316_v48 = vld [vmem:[%s2102_s7 + $0x90] sm:$0xff]  ;;  %v2327_v49 = vld [vmem:[%s2102_s7 + $0x82] sm:$0xff]  ;;  %v2330_v50 = vld [vmem:[%s2102_s7 + $0x98] sm:$0xff] }
  0x23   : > { %v2343_v52 = vld [vmem:[%s2102_s7 + $0x92] sm:$0xff]  ;;  %v2346_v53 = vld [vmem:[%s2102_s7 + $0xa8] sm:$0xff]  ;;  %v2363_v58 = vld [vmem:[%s2102_s7 + $0x9a] sm:$0xff] }
  0x24   : > { %v2366_v59 = vld [vmem:[%s2102_s7 + $0xb0] sm:$0xff]  ;;  %v2386_v1 = vld [vmem:[%s2102_s7 + $0xc0] sm:$0xff]  ;;  %v2409_v14 = vld [vmem:[%s2102_s7 + $0xc8] sm:$0xff] }
  0x25   : > { %v2383_v0 = vld [vmem:[%s2102_s7 + $0xaa] sm:$0xff]  ;;  %v2389_v3 = vld [vmem:[%s2102_s7 + $0xc1] sm:$0xff]  ;;  %v2406_v12 = vld [vmem:[%s2102_s7 + $0xb2] sm:$0xff] }
  0x26   : > { %1680 = vmatmul.msk.f32.gmra.mxu1 %vm234_vm1, %v2155_v17  ;;  %1684 = vmatmul.msk.f32.gmra.mxu2 %vm234_vm1, %v2158_v18  ;;  %v2412_v16 = vld [vmem:[%s2102_s7 + $0xc9] sm:$0xff] }
  0x27   : > { %1688 = vmatmul.msk.f32.gmra.mxu3 %vm234_vm1, %v2161_v19  ;;  %1676 = vmatmul.msk.f32.gmra.mxu0 %vm234_vm1, %v218_v20  ;;  %2694 = vst [vmem:[#allocation4_spill] sm:$0xff] %v2412_v16 }
  0x2e   : > { %1681 = vmatmul.msk.f32.gmra.mxu1 %vm234_vm1, %v2172_v21  ;;  %1685 = vmatmul.msk.f32.gmra.mxu2 %vm234_vm1, %v2175_v22 }
  0x2f   : > { %1689 = vmatmul.msk.f32.gmra.mxu3 %vm234_vm1, %v2178_v23  ;;  %1677 = vmatmul.msk.f32.gmra.mxu0 %vm234_vm1, %v219_v24 }
  0x36   : > { %1691 = vmatmul.msk.f32.vlgmr.msrb.gmra.mxu1 %vm234_vm1, %v199_v25  ;;  %1709 = vmatmul.msk.f32.vlgmr.msrb.gmra.mxu2 %vm234_vm1, %v468_v26 }
  0x37   : > { %1745 = vmatmul.msk.f32.vlgmr.msrb.gmra.mxu3 %vm234_vm1, %v1727_v27  ;;  %1779 = vmatmul.msk.f32.vlgmr.msrb.gmra.mxu0 %vm234_vm1, %v218_v20 }
  0x3e   : > { %1692 = vmatmul.msk.f32.gmra.mxu1 %vm234_vm1, %v200_v28  ;;  %1710 = vmatmul.msk.f32.gmra.mxu2 %vm234_vm1, %v469_v29 }
  0x3f   : > { %1746 = vmatmul.msk.f32.gmra.mxu3 %vm234_vm1, %v1728_v30  ;;  %1780 = vmatmul.msk.f32.gmra.mxu0 %vm234_vm1, %v219_v24 }
  0x46   : > { %1693 = vmatmul.msk.f32.gmra.mxu1 %vm234_vm1, %v1727_v27  ;;  %1711 = vmatmul.msk.f32.gmra.mxu2 %vm234_vm1, %v2203_v31 }
  0x47   : > { %1747 = vmatmul.msk.f32.gmra.mxu3 %vm234_vm1, %v2206_v32  ;;  %1781 = vmatmul.msk.f32.gmra.mxu0 %vm234_vm1, %v2105_v5 }
  0x4e   : > { %1694 = vmatmul.msk.f32.gmra.mxu1 %vm234_vm1, %v1728_v30  ;;  %1712 = vmatmul.msk.f32.gmra.mxu2 %vm234_vm1, %v2216_v33 }
  0x4f   : > { %1748 = vmatmul.msk.f32.gmra.mxu3 %vm234_vm1, %v2219_v34  ;;  %1782 = vmatmul.msk.f32.gmra.mxu0 %vm234_vm1, %v2125_v10 }
  0x56   : > { %1695 = vmatmul.msk.f32.gmra.mxu1 %vm234_vm1, %v2206_v32  ;;  %1713 = vmatmul.msk.f32.gmra.mxu2 %vm234_vm1, %v2229_v35 }
  0x57   : > { %1749 = vmatmul.msk.f32.gmra.mxu3 %vm234_vm1, %v2232_v36  ;;  %1783 = vmatmul.msk.f32.gmra.mxu0 %vm234_vm1, %v2155_v17 }
  0x5e   : > { %1696 = vmatmul.msk.f32.gmra.mxu1 %vm234_vm1, %v2219_v34  ;;  %1714 = vmatmul.msk.f32.gmra.mxu2 %vm234_vm1, %v2243_v37 }
  0x5f   : > { %1750 = vmatmul.msk.f32.gmra.mxu3 %vm234_vm1, %v2246_v38  ;;  %1784 = vmatmul.msk.f32.gmra.mxu0 %vm234_vm1, %v2172_v21 }
  0x66   : > { %1697 = vmatmul.msk.f32.gmra.mxu1 %vm234_vm1, %v2232_v36  ;;  %1715 = vmatmul.msk.f32.gmra.mxu2 %vm234_vm1, %v2257_v39 }
  0x67   : > { %1751 = vmatmul.msk.f32.gmra.mxu3 %vm234_vm1, %v2260_v40  ;;  %1785 = vmatmul.msk.f32.gmra.mxu0 %vm234_vm1, %v2108_v6 }
  0x6e   : > { %1698 = vmatmul.msk.f32.gmra.mxu1 %vm234_vm1, %v2246_v38  ;;  %1716 = vmatmul.msk.f32.gmra.mxu2 %vm234_vm1, %v2271_v41 }
  0x6f   : > { %1752 = vmatmul.msk.f32.gmra.mxu3 %vm234_vm1, %v2274_v42  ;;  %1786 = vmatmul.msk.f32.gmra.mxu0 %vm234_vm1, %v2128_v11 }
  0x76   : > { %1699 = vmatmul.msk.f32.gmra.mxu1 %vm234_vm1, %v2260_v40  ;;  %1717 = vmatmul.msk.f32.gmra.mxu2 %vm234_vm1, %v2285_v43 }
  0x77   : > { %1753 = vmatmul.msk.f32.gmra.mxu3 %vm234_vm1, %v2288_v44  ;;  %1787 = vmatmul.msk.f32.gmra.mxu0 %vm234_vm1, %v2158_v18 }
  0x7e   : > { %1700 = vmatmul.msk.f32.gmra.mxu1 %vm234_vm1, %v2274_v42  ;;  %1718 = vmatmul.msk.f32.gmra.mxu2 %vm234_vm1, %v2299_v45 }
  0x7f   : > { %1754 = vmatmul.msk.f32.gmra.mxu3 %vm234_vm1, %v2302_v46  ;;  %1788 = vmatmul.msk.f32.gmra.mxu0 %vm234_vm1, %v2175_v22 }
  0x86   : > { %1701 = vmatmul.msk.f32.gmra.mxu1 %vm234_vm1, %v2288_v44  ;;  %1719 = vmatmul.msk.f32.gmra.mxu2 %vm234_vm1, %v2313_v47 }
  0x87   : > { %1755 = vmatmul.msk.f32.gmra.mxu3 %vm234_vm1, %v2316_v48  ;;  %1789 = vmatmul.msk.f32.gmra.mxu0 %vm234_vm1, %v2111_v7 }
  0x8e   : > { %1702 = vmatmul.msk.f32.gmra.mxu1 %vm234_vm1, %v2302_v46  ;;  %1720 = vmatmul.msk.f32.gmra.mxu2 %vm234_vm1, %v2327_v49 }
  0x8f   : > { %1756 = vmatmul.msk.f32.gmra.mxu3 %vm234_vm1, %v2330_v50  ;;  %1790 = vmatmul.msk.f32.gmra.mxu0 %vm234_vm1, %v2135_v13 }
  0x93   : > { %v2340_v51 = vpop.f32.mrf.mxu1 }
  0x94   : > { %v304_v54 = vpop.f32.mrf.mxu0 }
  0x96   : > { %1703 = vmatmul.msk.f32.gmra.mxu1 %vm234_vm1, %v2316_v48  ;;  %1721 = vmatmul.msk.f32.gmra.mxu2 %vm234_vm1, %v2343_v52 }
  0x97   : > { %1757 = vmatmul.msk.f32.gmra.mxu3 %vm234_vm1, %v2346_v53  ;;  %1791 = vmatmul.msk.f32.gmra.mxu0 %vm234_vm1, %v2161_v19 }
  0x99   : > { %v2356_v55 = vpop.f32.mrf.mxu2 }
  0x9a   : > { %v2358_v56 = vpop.f32.mrf.mxu3 }
  0x9b   : > { %v2360_v57 = vpop.f32.mrf.mxu1 }
  0x9c   : > { %v307_v60 = vpop.f32.mrf.mxu0 }
  0x9e   : > { %1704 = vmatmul.msk.f32.gmra.mxu1 %vm234_vm1, %v2330_v50  ;;  %1722 = vmatmul.msk.f32.gmra.mxu2 %vm234_vm1, %v2363_v58 }
  0x9f   : > { %1758 = vmatmul.msk.f32.gmra.mxu3 %vm234_vm1, %v2366_v59  ;;  %1792 = vmatmul.msk.f32.gmra.mxu0 %vm234_vm1, %v2178_v23 }
  0xa1   : > { %v2376_v61 = vpop.f32.mrf.mxu2 }
  0xa2   : > { %v2378_v62 = vpop.f32.mrf.mxu3 }
  0xa3   : > { %2692 = vst [vmem:[#allocation2_spill] sm:$0xff] %v2378_v62  ;;  %v2380_v63 = vpop.f32.mrf.mxu1 }
  0xa4   : > { %v310_v2 = vpop.f32.mrf.mxu0 }
  0xa6   : > { %1705 = vmatmul.msk.f32.gmra.mxu1 %vm234_vm1, %v2346_v53  ;;  %1723 = vmatmul.msk.f32.gmra.mxu2 %vm234_vm1, %v2383_v0 }
  0xa7   : > { %1759 = vmatmul.msk.f32.gmra.mxu3 %vm234_vm1, %v2386_v1  ;;  %1793 = vmatmul.msk.f32.gmra.mxu0 %vm234_vm1, %v2389_v3 }
  0xa9   : > { %v2399_v4 = vpop.f32.mrf.mxu2 }
  0xaa   : > { %v2401_v8 = vpop.f32.mrf.mxu3 }
  0xab   : > { %2693 = vst [vmem:[#allocation3_spill] sm:$0xff] %v2401_v8  ;;  %v2403_v9 = vpop.f32.mrf.mxu1 }
  0xac   : > { %v313_v15 = vpop.f32.mrf.mxu0 }
  0xae   : > { %1706 = vmatmul.msk.f32.gmra.mxu1 %vm234_vm1, %v2366_v59  ;;  %1724 = vmatmul.msk.f32.gmra.mxu2 %vm234_vm1, %v2406_v12 }
  0xaf   : > { %1760 = vmatmul.msk.f32.gmra.mxu3 %vm234_vm1, %v2409_v14  ;;  %1794 = vmatmul.msk.f32.gmra.mxu0 %vm234_vm1, %v2412_v16 }
  0xb1   : > { %v2422_v20 = vpop.f32.mrf.mxu2 }
  0xb2   : > { %v2424_v24 = vpop.f32.mrf.mxu3 }
  0xb3   : > { %2695 = vst [vmem:[#allocation5_spill] sm:$0xff] %v2424_v24  ;;  %v420_v25 = vpop.f32.mrf.mxu1 }
  0xb4   : > { %v857_v26 = vpop.f32.mrf.mxu0  ;;  %v421_v27 = vadd.f32 %v420_v25, %v304_v54 }
  0xb6   : > { %1813 = vmatmul.msk.f32.vlgmr.msra.gmra.mxu1 %vm234_vm1, %v2203_v31  ;;  %1849 = vmatmul.msk.f32.vlgmr.msra.gmra.mxu2 %vm234_vm1, %v2206_v32 }
  0xb7   : > { %1883 = vmatmul.msk.f32.vlgmr.msra.gmra.mxu3 %vm234_vm1, %v2105_v5  ;;  %1917 = vmatmul.msk.f32.vlgmr.msra.gmra.mxu0 %vm234_vm1, %v2229_v35 }
  0xb9   : > { %v554_v28 = vpop.f32.mrf.mxu2 }
  0xba   : > { %v602_v29 = vadd.f32 %v554_v28, %v421_v27  ;;  %v707_v30 = vpop.f32.mrf.mxu3 }
  0xbb   : > { %v423_v8 = vpop.f32.mrf.mxu1 }
  0xbc   : > { %v755_v24 = vadd.f32 %v707_v30, %v602_v29  ;;  %v860_v62 = vpop.f32.mrf.mxu0  ;;  %v424_v5 = vadd.f32 %v423_v8, %v307_v60 }
  0xbe   : > { %v2434_v16 = vadd.f32 %v857_v26, %v755_v24  ;;  %1814 = vmatmul.msk.f32.gmra.mxu1 %vm234_vm1, %v2216_v33  ;;  %1850 = vmatmul.msk.f32.gmra.mxu2 %vm234_vm1, %v2219_v34 }
  0xbf   : > { %1884 = vmatmul.msk.f32.gmra.mxu3 %vm234_vm1, %v2125_v10  ;;  %1918 = vmatmul.msk.f32.gmra.mxu0 %vm234_vm1, %v2243_v37 }
  0xc1   : > { %v557_v31 = vpop.f32.mrf.mxu2 }
  0xc2   : > { %v603_v32 = vadd.f32 %v557_v31, %v424_v5  ;;  %v710_v54 = vpop.f32.mrf.mxu3 }
  0xc3   : > { %v426_v25 = vpop.f32.mrf.mxu1 }
  0xc4   : > { %v756_v27 = vadd.f32 %v710_v54, %v603_v32  ;;  %v863_v24 = vpop.f32.mrf.mxu0  ;;  %v427_v10 = vadd.f32 %v426_v25, %v310_v2 }
  0xc6   : > { %v2444_v26 = vadd.f32 %v860_v62, %v756_v27  ;;  %1815 = vmatmul.msk.f32.gmra.mxu1 %vm234_vm1, %v2229_v35  ;;  %1851 = vmatmul.msk.f32.gmra.mxu2 %vm234_vm1, %v2232_v36 }
  0xc7   : > { %1885 = vmatmul.msk.f32.gmra.mxu3 %vm234_vm1, %v2155_v17  ;;  %1919 = vmatmul.msk.f32.gmra.mxu0 %vm234_vm1, %v2257_v39 }
  0xc9   : > { %v560_v33 = vpop.f32.mrf.mxu2 }
  0xca   : > { %v604_v34 = vadd.f32 %v560_v33, %v427_v10  ;;  %v713_v60 = vpop.f32.mrf.mxu3 }
  0xcb   : > { %v429_v8 = vpop.f32.mrf.mxu1 }
  0xcc   : > { %v757_v28 = vadd.f32 %v713_v60, %v604_v34  ;;  %v866_v62 = vpop.f32.mrf.mxu0  ;;  %v430_v17 = vadd.f32 %v429_v8, %v313_v15 }
  0xce   : > { %v2454_v29 = vadd.f32 %v863_v24, %v757_v28  ;;  %1816 = vmatmul.msk.f32.gmra.mxu1 %vm234_vm1, %v2243_v37  ;;  %1852 = vmatmul.msk.f32.gmra.mxu2 %vm234_vm1, %v2246_v38 }
  0xcf   : > { %1886 = vmatmul.msk.f32.gmra.mxu3 %vm234_vm1, %v2172_v21  ;;  %1920 = vmatmul.msk.f32.gmra.mxu0 %vm234_vm1, %v2271_v41 }
  0xd1   : > { %v563_v35 = vpop.f32.mrf.mxu2 }
  0xd2   : > { %v605_v36 = vadd.f32 %v563_v35, %v430_v17  ;;  %v716_v2 = vpop.f32.mrf.mxu3 }
  0xd3   : > { %v432_v30 = vpop.f32.mrf.mxu1 }
  0xd4   : > { %v758_v5 = vadd.f32 %v716_v2, %v605_v36  ;;  %v869_v31 = vpop.f32.mrf.mxu0  ;;  %v433_v21 = vadd.f32 %v432_v30, %v2340_v51 }
  0xd6   : > { %v2464_v32 = vadd.f32 %v866_v62, %v758_v5  ;;  %1817 = vmatmul.msk.f32.gmra.mxu1 %vm234_vm1, %v2257_v39  ;;  %1853 = vmatmul.msk.f32.gmra.mxu2 %vm234_vm1, %v2260_v40 }
  0xd7   : > { %1887 = vmatmul.msk.f32.gmra.mxu3 %vm234_vm1, %v2108_v6  ;;  %1921 = vmatmul.msk.f32.gmra.mxu0 %vm234_vm1, %v2285_v43 }
  0xd9   : > { %v566_v37 = vpop.f32.mrf.mxu2 }
  0xda   : > { %v606_v38 = vadd.f32 %v566_v37, %v433_v21  ;;  %v719_v15 = vpop.f32.mrf.mxu3 }
  0xdb   : > { %v435_v54 = vpop.f32.mrf.mxu1 }
  0xdc   : > { %v759_v25 = vadd.f32 %v719_v15, %v606_v38  ;;  %v872_v27 = vpop.f32.mrf.mxu0  ;;  %v436_v6 = vadd.f32 %v435_v54, %v2360_v57 }
  0xde   : > { %v2475_v24 = vadd.f32 %v869_v31, %v759_v25  ;;  %1818 = vmatmul.msk.f32.gmra.mxu1 %vm234_vm1, %v2271_v41  ;;  %1854 = vmatmul.msk.f32.gmra.mxu2 %vm234_vm1, %v2274_v42 }
  0xdf   : > { %1888 = vmatmul.msk.f32.gmra.mxu3 %vm234_vm1, %v2128_v11  ;;  %1922 = vmatmul.msk.f32.gmra.mxu0 %vm234_vm1, %v2299_v45 }
  0xe1   : > { %v569_v39 = vpop.f32.mrf.mxu2 }
  0xe2   : > { %v607_v40 = vadd.f32 %v569_v39, %v436_v6  ;;  %v722_v51 = vpop.f32.mrf.mxu3 }
  0xe3   : > { %v438_v10 = vpop.f32.mrf.mxu1 }
  0xe4   : > { %v760_v33 = vadd.f32 %v722_v51, %v607_v40  ;;  %v875_v34 = vpop.f32.mrf.mxu0  ;;  %v439_v11 = vadd.f32 %v438_v10, %v2380_v63 }
  0xe6   : > { %v2486_v60 = vadd.f32 %v872_v27, %v760_v33  ;;  %1819 = vmatmul.msk.f32.gmra.mxu1 %vm234_vm1, %v2285_v43  ;;  %1855 = vmatmul.msk.f32.gmra.mxu2 %vm234_vm1, %v2288_v44 }
  0xe7   : > { %1889 = vmatmul.msk.f32.gmra.mxu3 %vm234_vm1, %v2158_v18  ;;  %1923 = vmatmul.msk.f32.gmra.mxu0 %vm234_vm1, %v2313_v47 }
  0xe9   : > { %v572_v41 = vpop.f32.mrf.mxu2 }
  0xea   : > { %v608_v42 = vadd.f32 %v572_v41, %v439_v11  ;;  %v725_v57 = vpop.f32.mrf.mxu3 }
  0xeb   : > { %v441_v8 = vpop.f32.mrf.mxu1 }
  0xec   : > { %v761_v28 = vadd.f32 %v725_v57, %v608_v42  ;;  %v878_v62 = vpop.f32.mrf.mxu0  ;;  %v442_v18 = vadd.f32 %v441_v8, %v2403_v9 }
  0xee   : > { %v2497_v17 = vadd.f32 %v875_v34, %v761_v28  ;;  %1820 = vmatmul.msk.f32.gmra.mxu1 %vm234_vm1, %v2299_v45  ;;  %1856 = vmatmul.msk.f32.gmra.mxu2 %vm234_vm1, %v2302_v46  ;;  %v1911_v34 = vld [vmem:[%s2102_s7 + $0xc2] sm:$0xff] }
  0xef   : > { %1890 = vmatmul.msk.f32.gmra.mxu3 %vm234_vm1, %v2175_v22  ;;  %1924 = vmatmul.msk.f32.gmra.mxu0 %vm234_vm1, %v2327_v49 }
  0xf1   : > { %v575_v43 = vpop.f32.mrf.mxu2 }
  0xf2   : > { %v609_v44 = vadd.f32 %v575_v43, %v442_v18  ;;  %v728_v63 = vpop.f32.mrf.mxu3 }
  0xf3   : > { %v444_v35 = vpop.f32.mrf.mxu1 }
  0xf4   : > { %v762_v36 = vadd.f32 %v728_v63, %v609_v44  ;;  %v881_v2 = vpop.f32.mrf.mxu0  ;;  %v445_v22 = vadd.f32 %v444_v35, %v2356_v55  ;;  %v1845_v44 = vld [vmem:[%s2102_s7 + $0xd8] sm:$0xff] }
  0xf5   : > { %v1879_v35 = vld [vmem:[%s2102_s7 + $0xd9] sm:$0xff] }
  0xf6   : > { %v2508_v30 = vadd.f32 %v878_v62, %v762_v36  ;;  %1821 = vmatmul.msk.f32.gmra.mxu1 %vm234_vm1, %v2313_v47  ;;  %1857 = vmatmul.msk.f32.gmra.mxu2 %vm234_vm1, %v2316_v48  ;;  %v1913_v36 = vld [vmem:[%s2102_s7 + $0xda] sm:$0xff] }
  0xf7   : > { %1891 = vmatmul.msk.f32.gmra.mxu3 %vm234_vm1, %v2111_v7  ;;  %1925 = vmatmul.msk.f32.gmra.mxu0 %vm234_vm1, %v2343_v52 }
  0xf9   : > { %v578_v45 = vpop.f32.mrf.mxu2 }
  0xfa   : > { %v610_v46 = vadd.f32 %v578_v45, %v445_v22  ;;  %v731_v9 = vpop.f32.mrf.mxu3 }
  0xfb   : > { %v447_v5 = vpop.f32.mrf.mxu1 }
  0xfc   : > { %v763_v31 = vadd.f32 %v731_v9, %v610_v46  ;;  %v884_v21 = vpop.f32.mrf.mxu0  ;;  %v448_v7 = vadd.f32 %v447_v5, %v2376_v61 }
  0xfe   : > { %v2519_v37 = vadd.f32 %v881_v2, %v763_v31  ;;  %1822 = vmatmul.msk.f32.gmra.mxu1 %vm234_vm1, %v2327_v49  ;;  %1858 = vmatmul.msk.f32.gmra.mxu2 %vm234_vm1, %v2330_v50  ;;  %v2698_v2 = vld [vmem:[#allocation3_spill] sm:$0xff]  ;;  %v1846_v31 = vld [vmem:[%s2102_s7 + $0xe0] sm:$0xff] }
  0xff   : > { %1892 = vmatmul.msk.f32.gmra.mxu3 %vm234_vm1, %v2135_v13  ;;  %1926 = vmatmul.msk.f32.gmra.mxu0 %vm234_vm1, %v2363_v58 }
 0x101   : > { %v581_v47 = vpop.f32.mrf.mxu2 }
 0x102   : > { %v611_v48 = vadd.f32 %v581_v47, %v448_v7  ;;  %v734_v55 = vpop.f32.mrf.mxu3  ;;  %v1880_v7 = vld [vmem:[%s2102_s7 + $0xe1] sm:$0xff] }
 0x103   : > { %v450_v38 = vpop.f32.mrf.mxu1 }
 0x104   : > { %v764_v15 = vadd.f32 %v734_v55, %v611_v48  ;;  %v887_v54 = vpop.f32.mrf.mxu0  ;;  %v451_v13 = vadd.f32 %v450_v38, %v2399_v4  ;;  %v1914_v48 = vld [vmem:[%s2102_s7 + $0xe2] sm:$0xff]  ;;  %v2699_v38 = vld [vmem:[#allocation5_spill] sm:$0xff] }
 0x106   : > { %v2530_v25 = vadd.f32 %v884_v21, %v764_v15  ;;  %1823 = vmatmul.msk.f32.gmra.mxu1 %vm234_vm1, %v2343_v52  ;;  %1859 = vmatmul.msk.f32.gmra.mxu2 %vm234_vm1, %v2346_v53 }
 0x107   : > { %1893 = vmatmul.msk.f32.gmra.mxu3 %vm234_vm1, %v2161_v19  ;;  %1927 = vmatmul.msk.f32.gmra.mxu0 %vm234_vm1, %v2383_v0 }
 0x109   : > { %v584_v49 = vpop.f32.mrf.mxu2 }
 0x10a   : > { %v612_v50 = vadd.f32 %v584_v49, %v451_v13  ;;  %v737_v61 = vpop.f32.mrf.mxu3 }
 0x10b   : > { %v453_v27 = vpop.f32.mrf.mxu1 }
 0x10c   : > { %v765_v6 = vadd.f32 %v737_v61, %v612_v50  ;;  %v890_v39 = vpop.f32.mrf.mxu0  ;;  %v454_v19 = vadd.f32 %v453_v27, %v2422_v20 }
 0x10e   : > { %v2541_v40 = vadd.f32 %v887_v54, %v765_v6  ;;  %1824 = vmatmul.msk.f32.gmra.mxu1 %vm234_vm1, %v2363_v58  ;;  %1860 = vmatmul.msk.f32.gmra.mxu2 %vm234_vm1, %v2366_v59 }
 0x10f   : > { %1894 = vmatmul.msk.f32.gmra.mxu3 %vm234_vm1, %v2178_v23  ;;  %1928 = vmatmul.msk.f32.gmra.mxu0 %vm234_vm1, %v2406_v12 }
 0x111   : > { %v587_v52 = vpop.f32.mrf.mxu2 }
 0x112   : > { %v613_v53 = vadd.f32 %v587_v52, %v454_v19  ;;  %v740_v4 = vpop.f32.mrf.mxu3 }
 0x113   : > { %v456_v51 = vpop.f32.mrf.mxu1 }
 0x114   : > { %v766_v10 = vadd.f32 %v740_v4, %v613_v53  ;;  %v893_v33 = vpop.f32.mrf.mxu0  ;;  %v457_v23 = vadd.f32 %v456_v51, %v2358_v56  ;;  %v2697_v56 = vld [vmem:[#allocation2_spill] sm:$0xff] }
 0x116   : > { %v2553_v58 = vadd.f32 %v890_v39, %v766_v10  ;;  %1825 = vmatmul.msk.f32.gmra.mxu1 %vm234_vm1, %v2383_v0  ;;  %1861 = vmatmul.msk.f32.gmra.mxu2 %vm234_vm1, %v2386_v1  ;;  %v1912_v0 = vld [vmem:[%s2102_s7 + $0xca] sm:$0xff]  ;;  %v2602_v10 = vld [vmem:[%s2689_s2] ss:$0 sm:$0xff] }
 0x117   : > { %1895 = vmatmul.msk.f32.gmra.mxu3 %vm234_vm1, %v2389_v3  ;;  %1929 = vmatmul.msk.f32.gmra.mxu0 %vm234_vm1, %v1911_v34  ;;  %v2696_v1 = vld [vmem:[#allocation4_spill] sm:$0xff] }
 0x119   : > { %v590_v59 = vpop.f32.mrf.mxu2 }
 0x11a   : > { %v614_v20 = vadd.f32 %v590_v59, %v457_v23  ;;  %v743_v11 = vpop.f32.mrf.mxu3 }
 0x11b   : > { %v459_v41 = vpop.f32.mrf.mxu1 }
 0x11c   : > { %v767_v42 = vadd.f32 %v743_v11, %v614_v20  ;;  %v896_v57 = vpop.f32.mrf.mxu0  ;;  %v460_v3 = vadd.f32 %v459_v41, %v2697_v56 }
 0x11e   : > { %v2564_v8 = vadd.f32 %v893_v33, %v767_v42  ;;  %1826 = vmatmul.msk.f32.gmra.mxu1 %vm234_vm1, %v2406_v12  ;;  %1862 = vmatmul.msk.f32.gmra.mxu2 %vm234_vm1, %v2409_v14 }
 0x11f   : > { %1896 = vmatmul.msk.f32.gmra.mxu3 %vm234_vm1, %v2696_v1  ;;  %1930 = vmatmul.msk.f32.gmra.mxu0 %vm234_vm1, %v1912_v0 }
 0x121   : > { %v593_v28 = vpop.f32.mrf.mxu2 }
 0x122   : > { %v615_v62 = vadd.f32 %v593_v28, %v460_v3  ;;  %v746_v18 = vpop.f32.mrf.mxu3 }
 0x123   : > { %v462_v43 = vpop.f32.mrf.mxu1 }
 0x124   : > { %v768_v63 = vadd.f32 %v746_v18, %v615_v62  ;;  %v899_v12 = vpop.f32.mrf.mxu0  ;;  %v463_v22 = vadd.f32 %v462_v43, %v2698_v2 }
 0x126   : > { %v2577_v14 = vadd.f32 %v896_v57, %v768_v63  ;;  %1827 = vmatmul.msk.f32.gmra.mxu1 %vm234_vm1, %v1911_v34  ;;  %1863 = vmatmul.msk.f32.gmra.mxu2 %vm234_vm1, %v1845_v44 }
 0x127   : > { %1897 = vmatmul.msk.f32.gmra.mxu3 %vm234_vm1, %v1879_v35  ;;  %1931 = vmatmul.msk.f32.gmra.mxu0 %vm234_vm1, %v1913_v36 }
 0x129   : > { %v596_v45 = vpop.f32.mrf.mxu2 }
 0x12a   : > { %v616_v46 = vadd.f32 %v596_v45, %v463_v22  ;;  %v749_v9 = vpop.f32.mrf.mxu3 }
 0x12b   : > { %v465_v5 = vpop.f32.mrf.mxu1 }
 0x12c   : > { %v769_v21 = vadd.f32 %v749_v9, %v616_v46  ;;  %v902_v47 = vpop.f32.mrf.mxu0  ;;  %v466_v15 = vadd.f32 %v465_v5, %v2699_v38 }
 0x12e   : > { %v2588_v55 = vadd.f32 %v899_v12, %v769_v21  ;;  %1828 = vmatmul.msk.f32.gmra.mxu1 %vm234_vm1, %v1912_v0  ;;  %1864 = vmatmul.msk.f32.gmra.mxu2 %vm234_vm1, %v1846_v31 }
 0x12f   : > { %1898 = vmatmul.msk.f32.gmra.mxu3 %vm234_vm1, %v1880_v7  ;;  %1932 = vmatmul.msk.f32.gmra.mxu0 %vm234_vm1, %v1914_v48 }
 0x131   : > { %v599_v54 = vpop.f32.mrf.mxu2 }
 0x132   : > { %v617_v13 = vadd.f32 %v599_v54, %v466_v15  ;;  %v752_v49 = vpop.f32.mrf.mxu3 }
 0x133   : > { %v1007_v50 = vpop.f32.mrf.mxu1 }
 0x134   : > { %v770_v61 = vadd.f32 %v752_v49, %v617_v13  ;;  %v1460_v27 = vpop.f32.mrf.mxu0  ;;  %v1055_v39 = vadd.f32 %v1007_v50, %v2434_v16 }
 0x136   : > { %v2595_v6 = vadd.f32 %v902_v47, %v770_v61 }
 0x139   : > { %v1160_v19 = vpop.f32.mrf.mxu2 }
 0x13a   : > { %v1208_v52 = vadd.f32 %v1160_v19, %v1055_v39  ;;  %v1310_v53 = vpop.f32.mrf.mxu3 }
 0x13b   : > { %v1010_v4 = vpop.f32.mrf.mxu1 }
 0x13c   : > { %v1358_v51 = vadd.f32 %v1310_v53, %v1208_v52  ;;  %v1463_v33 = vpop.f32.mrf.mxu0  ;;  %v1056_v16 = vadd.f32 %v1010_v4, %v2444_v26 }
 0x13e   : > { %v1508_v34 = vadd.f32 %v1460_v27, %v1358_v51 }
 0x140   : > { %v1528_v23 = vadd.f32 %v2602_v10, %v1508_v34 }
 0x141   : > { %v1163_v59 = vpop.f32.mrf.mxu2 }
 0x142   : > { %1544 = vst.msk [vmem:[%s2607_s13] sm:$0xff] %vm234_vm1, %v1528_v23  ;;  %v1209_v20 = vadd.f32 %v1163_v59, %v1056_v16  ;;  %v1313_v11 = vpop.f32.mrf.mxu3 }
 0x143   : > { %v1013_v41 = vpop.f32.mrf.mxu1 }
 0x144   : > { %v1359_v42 = vadd.f32 %v1313_v11, %v1209_v20  ;;  %v1466_v57 = vpop.f32.mrf.mxu0  ;;  %v1057_v1 = vadd.f32 %v1013_v41, %v2454_v29 }
 0x146   : > { %v1509_v0 = vadd.f32 %v1463_v33, %v1359_v42 }
 0x148   : > { %v1529_v56 = vadd.f32 %v2602_v10, %v1509_v0 }
 0x149   : > { %v1166_v3 = vpop.f32.mrf.mxu2 }
 0x14a   : > { %1545 = vst.msk [vmem:[%s2607_s13 + $0x8] sm:$0xff] %vm234_vm1, %v1529_v56  ;;  %v1210_v26 = vadd.f32 %v1166_v3, %v1057_v1  ;;  %v1316_v28 = vpop.f32.mrf.mxu3 }
 0x14b   : > { %v1016_v62 = vpop.f32.mrf.mxu1 }
 0x14c   : > { %v1360_v18 = vadd.f32 %v1316_v28, %v1210_v26  ;;  %v1469_v43 = vpop.f32.mrf.mxu0  ;;  %v1058_v63 = vadd.f32 %v1016_v62, %v2464_v32 }
 0x14e   : > { %v1510_v44 = vadd.f32 %v1466_v57, %v1360_v18 }
 0x150   : > { %v1530_v35 = vadd.f32 %v2602_v10, %v1510_v44 }
 0x151   : > { %v1169_v12 = vpop.f32.mrf.mxu2 }
 0x152   : > { %1546 = vst.msk [vmem:[%s2607_s13 + $0x10] sm:$0xff] %vm234_vm1, %v1530_v35  ;;  %v1211_v29 = vadd.f32 %v1169_v12, %v1058_v63  ;;  %v1319_v36 = vpop.f32.mrf.mxu3 }
 0x153   : > { %v1019_v2 = vpop.f32.mrf.mxu1 }
 0x154   : > { %v1361_v22 = vadd.f32 %v1319_v36, %v1211_v29  ;;  %v1472_v45 = vpop.f32.mrf.mxu0  ;;  %v1059_v9 = vadd.f32 %v1019_v2, %v2475_v24 }
 0x156   : > { %v1511_v46 = vadd.f32 %v1469_v43, %v1361_v22 }
 0x158   : > { %v1531_v5 = vadd.f32 %v2602_v10, %v1511_v46 }
 0x159   : > { %v1172_v31 = vpop.f32.mrf.mxu2 }
 0x15a   : > { %1547 = vst.msk [vmem:[%s2607_s13 + $0x18] sm:$0xff] %vm234_vm1, %v1531_v5  ;;  %v1212_v32 = vadd.f32 %v1172_v31, %v1059_v9  ;;  %v1322_v21 = vpop.f32.mrf.mxu3 }
 0x15b   : > { %v1022_v7 = vpop.f32.mrf.mxu1 }
 0x15c   : > { %v1362_v47 = vadd.f32 %v1322_v21, %v1212_v32  ;;  %v1475_v48 = vpop.f32.mrf.mxu0  ;;  %v1060_v15 = vadd.f32 %v1022_v7, %v2486_v60 }
 0x15e   : > { %v1512_v38 = vadd.f32 %v1472_v45, %v1362_v47 }
 0x160   : > { %v1532_v54 = vadd.f32 %v2602_v10, %v1512_v38 }
 0x161   : > { %v1175_v13 = vpop.f32.mrf.mxu2 }
 0x162   : > { %1548 = vst.msk [vmem:[%s2607_s13 + $0x20] sm:$0xff] %vm234_vm1, %v1532_v54  ;;  %v1213_v24 = vadd.f32 %v1175_v13, %v1060_v15  ;;  %v1325_v49 = vpop.f32.mrf.mxu3 }
 0x163   : > { %v1025_v50 = vpop.f32.mrf.mxu1 }
 0x164   : > { %v1363_v61 = vadd.f32 %v1325_v49, %v1213_v24  ;;  %v1478_v27 = vpop.f32.mrf.mxu0  ;;  %v1061_v19 = vadd.f32 %v1025_v50, %v2497_v17 }
 0x166   : > { %v1513_v39 = vadd.f32 %v1475_v48, %v1363_v61 }
 0x168   : > { %v1533_v52 = vadd.f32 %v2602_v10, %v1513_v39 }
 0x169   : > { %v1178_v53 = vpop.f32.mrf.mxu2 }
 0x16a   : > { %1549 = vst.msk [vmem:[%s2607_s13 + $0x28] sm:$0xff] %vm234_vm1, %v1533_v52  ;;  %v1214_v60 = vadd.f32 %v1178_v53, %v1061_v19  ;;  %v1328_v4 = vpop.f32.mrf.mxu3 }
 0x16b   : > { %v1028_v51 = vpop.f32.mrf.mxu1 }
 0x16c   : > { %v1364_v33 = vadd.f32 %v1328_v4, %v1214_v60  ;;  %v1481_v34 = vpop.f32.mrf.mxu0  ;;  %v1062_v23 = vadd.f32 %v1028_v51, %v2508_v30 }
 0x16e   : > { %v1514_v16 = vadd.f32 %v1478_v27, %v1364_v33 }
 0x170   : > { %v1534_v59 = vadd.f32 %v2602_v10, %v1514_v16 }
 0x171   : > { %v1181_v20 = vpop.f32.mrf.mxu2 }
 0x172   : > { %1550 = vst.msk [vmem:[%s2607_s13 + $0x30] sm:$0xff] %vm234_vm1, %v1534_v59  ;;  %v1215_v17 = vadd.f32 %v1181_v20, %v1062_v23  ;;  %v1331_v11 = vpop.f32.mrf.mxu3 }
 0x173   : > { %v1031_v41 = vpop.f32.mrf.mxu1 }
 0x174   : > { %v1365_v42 = vadd.f32 %v1331_v11, %v1215_v17  ;;  %v1484_v57 = vpop.f32.mrf.mxu0  ;;  %v1063_v1 = vadd.f32 %v1031_v41, %v2519_v37 }
 0x176   : > { %v1515_v0 = vadd.f32 %v1481_v34, %v1365_v42 }
 0x178   : > { %v1535_v56 = vadd.f32 %v2602_v10, %v1515_v0 }
 0x179   : > { %v1184_v3 = vpop.f32.mrf.mxu2 }
 0x17a   : > { %1551 = vst.msk [vmem:[%s2607_s13 + $0x38] sm:$0xff] %vm234_vm1, %v1535_v56  ;;  %v1216_v30 = vadd.f32 %v1184_v3, %v1063_v1  ;;  %v1334_v26 = vpop.f32.mrf.mxu3 }
 0x17b   : > { %v1034_v28 = vpop.f32.mrf.mxu1 }
 0x17c   : > { %v1366_v62 = vadd.f32 %v1334_v26, %v1216_v30  ;;  %v1487_v18 = vpop.f32.mrf.mxu0  ;;  %v1064_v44 = vadd.f32 %v1034_v28, %v2530_v25 }
 0x17e   : > { %v1516_v43 = vadd.f32 %v1484_v57, %v1366_v62 }
 0x180   : > { %v1536_v63 = vadd.f32 %v2602_v10, %v1516_v43 }
 0x181   : > { %v1187_v35 = vpop.f32.mrf.mxu2 }
 0x182   : > { %1552 = vst.msk [vmem:[%s2607_s13 + $0x40] sm:$0xff] %vm234_vm1, %v1536_v63  ;;  %v1217_v37 = vadd.f32 %v1187_v35, %v1064_v44  ;;  %v1337_v12 = vpop.f32.mrf.mxu3 }
 0x183   : > { %v1037_v29 = vpop.f32.mrf.mxu1 }
 0x184   : > { %v1367_v36 = vadd.f32 %v1337_v12, %v1217_v37  ;;  %v1490_v2 = vpop.f32.mrf.mxu0  ;;  %v1065_v45 = vadd.f32 %v1037_v29, %v2541_v40 }
 0x186   : > { %v1517_v22 = vadd.f32 %v1487_v18, %v1367_v36 }
 0x188   : > { %v1537_v46 = vadd.f32 %v2602_v10, %v1517_v22 }
 0x189   : > { %v1190_v9 = vpop.f32.mrf.mxu2 }
 0x18a   : > { %1553 = vst.msk [vmem:[%s2607_s13 + $0x48] sm:$0xff] %vm234_vm1, %v1537_v46  ;;  %v1218_v25 = vadd.f32 %v1190_v9, %v1065_v45  ;;  %v1340_v5 = vpop.f32.mrf.mxu3 }
 0x18b   : > { %v1040_v31 = vpop.f32.mrf.mxu1 }
 0x18c   : > { %v1368_v32 = vadd.f32 %v1340_v5, %v1218_v25  ;;  %v1493_v21 = vpop.f32.mrf.mxu0  ;;  %v1066_v47 = vadd.f32 %v1040_v31, %v2553_v58 }
 0x18e   : > { %v1518_v7 = vadd.f32 %v1490_v2, %v1368_v32 }
 0x190   : > { %v1538_v48 = vadd.f32 %v2602_v10, %v1518_v7 }
 0x191   : > { %v1193_v38 = vpop.f32.mrf.mxu2 }
 0x192   : > { %1554 = vst.msk [vmem:[%s2607_s13 + $0x50] sm:$0xff] %vm234_vm1, %v1538_v48  ;;  %v1219_v40 = vadd.f32 %v1193_v38, %v1066_v47  ;;  %v1343_v15 = vpop.f32.mrf.mxu3 }
 0x193   : > { %v1043_v54 = vpop.f32.mrf.mxu1 }
 0x194   : > { %v1369_v13 = vadd.f32 %v1343_v15, %v1219_v40  ;;  %v1496_v24 = vpop.f32.mrf.mxu0  ;;  %v1067_v50 = vadd.f32 %v1043_v54, %v2564_v8 }
 0x196   : > { %v1519_v49 = vadd.f32 %v1493_v21, %v1369_v13 }
 0x198   : > { %v1539_v61 = vadd.f32 %v2602_v10, %v1519_v49 }
 0x199   : > { %v1196_v27 = vpop.f32.mrf.mxu2 }
 0x19a   : > { %1555 = vst.msk [vmem:[%s2607_s13 + $0x58] sm:$0xff] %vm234_vm1, %v1539_v61  ;;  %v1220_v58 = vadd.f32 %v1196_v27, %v1067_v50  ;;  %v1346_v39 = vpop.f32.mrf.mxu3 }
 0x19b   : > { %v1046_v19 = vpop.f32.mrf.mxu1 }
 0x19c   : > { %v1370_v52 = vadd.f32 %v1346_v39, %v1220_v58  ;;  %v1499_v60 = vpop.f32.mrf.mxu0  ;;  %v1068_v4 = vadd.f32 %v1046_v19, %v2577_v14 }
 0x19e   : > { %v1520_v53 = vadd.f32 %v1496_v24, %v1370_v52 }
 0x1a0   : > { %v1540_v51 = vadd.f32 %v2602_v10, %v1520_v53 }
 0x1a1   : > { %v1199_v33 = vpop.f32.mrf.mxu2 }
 0x1a2   : > { %1556 = vst.msk [vmem:[%s2607_s13 + $0x60] sm:$0xff] %vm234_vm1, %v1540_v51  ;;  %v1221_v8 = vadd.f32 %v1199_v33, %v1068_v4  ;;  %v1349_v34 = vpop.f32.mrf.mxu3 }
 0x1a3   : > { %v1049_v16 = vpop.f32.mrf.mxu1 }
 0x1a4   : > { %v1371_v23 = vadd.f32 %v1349_v34, %v1221_v8  ;;  %v1069_v20 = vadd.f32 %v1049_v16, %v2588_v55  ;;  %v1502_v41 = vpop.f32.mrf.mxu0 }
 0x1a6   : > { %v1521_v59 = vadd.f32 %v1499_v60, %v1371_v23 }
 0x1a8   : > { %v1541_v17 = vadd.f32 %v2602_v10, %v1521_v59 }
 0x1a9   : > { %v1202_v11 = vpop.f32.mrf.mxu2 }
 0x1aa   : > { %1557 = vst.msk [vmem:[%s2607_s13 + $0x68] sm:$0xff] %vm234_vm1, %v1541_v17  ;;  %v1222_v14 = vadd.f32 %v1202_v11, %v1069_v20  ;;  %v1352_v42 = vpop.f32.mrf.mxu3 }
 0x1ab   : > { %v1052_v0 = vpop.f32.mrf.mxu1 }
 0x1ac   : > { %v1372_v57 = vadd.f32 %v1352_v42, %v1222_v14  ;;  %v1070_v56 = vadd.f32 %v1052_v0, %v2595_v6  ;;  %v1505_v28 = vpop.f32.mrf.mxu0 }
 0x1ae   : > { %v1522_v1 = vadd.f32 %v1502_v41, %v1372_v57 }
 0x1b0   : > { %v1542_v3 = vadd.f32 %v2602_v10, %v1522_v1 }
 0x1b1   : > { %v1205_v30 = vpop.f32.mrf.mxu2 }
 0x1b2   : > { %1558 = vst.msk [vmem:[%s2607_s13 + $0x70] sm:$0xff] %vm234_vm1, %v1542_v3  ;;  %v1223_v55 = vadd.f32 %v1205_v30, %v1070_v56  ;;  %v1355_v26 = vpop.f32.mrf.mxu3 }
 0x1b4   : > { %v1373_v62 = vadd.f32 %v1355_v26, %v1223_v55 }
 0x1b6   : > { %v1523_v18 = vadd.f32 %v1505_v28, %v1373_v62 }
 0x1b8   : > { %v1543_v43 = vadd.f32 %v2602_v10, %v1523_v18 }
 0x1ba   : > { %1559 = vst.msk [vmem:[%s2607_s13 + $0x78] sm:$0xff] %vm234_vm1, %v1543_v43 }
 0x1bb PF: > { %s13_s16 = sadd.s32 1, %s2018_s16   ;;  %s2700_s12 = smov %s2010_s14 }
 0x1bc   : > { %p10_p7 = scmp.ge.s32.totalorder %s13_s16, 6   ;;  %s2701_s13 = smov %s2014_s15 }
 0x1bd   : > { %s2702_s14 = smov %s2705_s17  ;;  %s2703_s15 = smov %s2709_s18 }
 0x1be   :  { %12 = sbr.rel (!%p10_p7) target bundleno = 3 (0x3), region = 73 }

</bundles_post_ra>
